<compile_context>
chip_gen: v7x
topology: tpu7x:2x2x1
jax: 0.10.0
libtpu: 0.0.40
codegen_flags: <defaults>
</compile_context>

<pallas_src>
import functools

import jax
import jax.numpy as jnp
from jax.experimental import pallas as pl
from jax.experimental.pallas import tpu as pltpu


# ---------------------------------------------------------------------------
# Fused kernel: conv3x3(SAME) + folded-BN + ReLU + global-avg-pool + Linear head
# Grid: (batch n [parallel], row-tile t [arbitrary / accumulated]).
# ---------------------------------------------------------------------------
def _conv_pool_fc_kernel(slab_ref, w_ref, s_ref, b_ref, fcw_ref, fcb_ref,
                         o_ref, acc_ref, *, th, w, cp, c_out, hw, nc_pad):
    t = pl.program_id(1)

    @pl.when(t == 0)
    def _():
        acc_ref[...] = jnp.zeros_like(acc_ref)

    slab = slab_ref[0]                                  # (th+2, w+2, cp) bf16 halo slab

    # conv3x3 as 9 shifted matmuls accumulated in f32; the 9x patch matrix never
    # exists in HBM (per-tile "im2col" stays in vregs).
    conv = jnp.zeros((th * w, c_out), jnp.float32)
    tap = 0
    for dh in range(3):
        for dw in range(3):
            lhs = slab[dh:dh + th, dw:dw + w, :].reshape(th * w, cp)      # (th*w, cp)
            conv = conv + jnp.dot(lhs, w_ref[tap * cp:(tap + 1) * cp, :],
                                  preferred_element_type=jnp.float32)
            tap += 1

    # folded BatchNorm + ReLU in f32
    feat = jnp.maximum(conv * s_ref[...] + b_ref[...], 0.0)              # (th*w, c_out)

    # global-average-pool partial sums on the MXU (all 8 sublanes carry the same sum)
    ones = jnp.ones((8, th * w), jnp.float32)
    acc_ref[...] += jnp.dot(ones, feat, preferred_element_type=jnp.float32)

    @pl.when(t == pl.num_programs(1) - 1)
    def _():
        pooled = acc_ref[...] * (1.0 / hw)                               # (8, c_out) f32
        y = jnp.dot(pooled.astype(jnp.bfloat16), fcw_ref[...],
                    preferred_element_type=jnp.float32) + fcb_ref[...]   # (8, nc_pad)
        o_ref[0] = y                                                     # lane-dense store


# ---------------------------------------------------------------------------
# Wrapper (layout prep only; all heavy work happens in the Pallas kernel)
# ---------------------------------------------------------------------------
def finetune_forward(x, conv_w, bn_scale, bn_bias, fc_w, fc_b, *, tile_h=8):
    """x: (N, C_in, H, W) float32 NCHW. Returns (N, num_classes) float32."""
    n, c_in, h, w = x.shape
    c_out = conv_w.shape[0]
    num_classes = fc_w.shape[0]

    cp = ((c_in + 7) // 8) * 8                                # per-tap K padded to 8
    nc_pad = ((num_classes + 127) // 128) * 128               # lane-dense classifier out
    th = min(tile_h, h)                                       # for real resnet maps pick
    assert h % th == 0                                        # th*w ~ 512-1024 rows
    n_tiles = h // th
    hw = h * w

    # NHWC, channel-pad, SAME halo pad, then per-tile row slabs (+1 halo row each side)
    x_nhwc = jnp.transpose(x, (0, 2, 3, 1))
    x_nhwc = jnp.pad(x_nhwc, ((0, 0), (0, 0), (0, 0), (0, cp - c_in)))
    xp = jnp.pad(x_nhwc, ((0, 0), (1, 1), (1, 1), (0, 0)))    # (N, H+2, W+2, cp)
    slabs = jnp.stack([xp[:, t * th:t * th + th + 2] for t in range(n_tiles)], axis=1)
    slabs = slabs.reshape(n * n_tiles, th + 2, w + 2, cp).astype(jnp.bfloat16)

    # (O,I,3,3) -> (kh, kw, I_pad, O) -> (9*cp, c_out), tap order [dh][dw] matches kernel
    w_khwc = jnp.transpose(conv_w, (2, 3, 1, 0))
    w_khwc = jnp.pad(w_khwc, ((0, 0), (0, 0), (0, cp - c_in), (0, 0)))
    w2d = w_khwc.reshape(9 * cp, c_out).astype(jnp.bfloat16)

    fcw = jnp.pad(fc_w.T, ((0, 0), (0, nc_pad - num_classes))).astype(jnp.bfloat16)
    fcb = jnp.pad(fc_b, (0, nc_pad - num_classes)).reshape(1, nc_pad).astype(jnp.float32)

    kernel = functools.partial(_conv_pool_fc_kernel, th=th, w=w, cp=cp,
                               c_out=c_out, hw=hw, nc_pad=nc_pad)

    out = pl.pallas_call(
        kernel,
        out_shape=jax.ShapeDtypeStruct((n, 8, nc_pad), jnp.float32),
        grid=(n, n_tiles),
        in_specs=[
            # streamed per-tile input slab (double-buffered by the Pallas pipeline)
            pl.BlockSpec((1, th + 2, w + 2, cp), lambda i, t: (i * n_tiles + t, 0, 0, 0)),
            # weights / BN / fc stay resident in VMEM across the whole grid
            pl.BlockSpec((9 * cp, c_out), lambda i, t: (0, 0)),
            pl.BlockSpec((1, c_out), lambda i, t: (0, 0)),
            pl.BlockSpec((1, c_out), lambda i, t: (0, 0)),
            pl.BlockSpec((c_out, nc_pad), lambda i, t: (0, 0)),
            pl.BlockSpec((1, nc_pad), lambda i, t: (0, 0)),
        ],
        out_specs=pl.BlockSpec((1, 8, nc_pad), lambda i, t: (i, 0, 0)),
        scratch_shapes=[pltpu.VMEM((8, c_out), jnp.float32)],   # pooled-sum accumulator
        compiler_params=pltpu.CompilerParams(
            dimension_semantics=("parallel", "arbitrary"),
            vmem_limit_bytes=32 * 1024 * 1024),
    )(slabs, w2d,
      bn_scale.reshape(1, c_out).astype(jnp.float32),
      bn_bias.reshape(1, c_out).astype(jnp.float32),
      fcw, fcb)

    return out[:, 0, :num_classes]


def _reference(x, conv_w, bn_scale, bn_bias, fc_w, fc_b):
    f = jax.lax.conv_general_dilated(
        x, conv_w, window_strides=(1, 1), padding="SAME",
        dimension_numbers=("NCHW", "OIHW", "NCHW"))
    f = jnp.maximum(f * bn_scale.reshape(1, -1, 1, 1) + bn_bias.reshape(1, -1, 1, 1), 0.0)
    pooled = jnp.mean(f, axis=(2, 3))
    return pooled @ fc_w.T + fc_b


if __name__ == "__main__":
    # small stand-in shapes: batch=2, RGB 16x16 input, feature width 32
    # (stand-in for resnet101's fc.in_features=2048), num_classes=8.
    N, C_IN, H, W = 2, 3, 16, 16
    C_FEAT, NUM_CLASSES = 32, 8

    key = jax.random.PRNGKey(0)
    kx, k1, k2, k3, k4, k5 = jax.random.split(key, 6)
    x = jax.random.normal(kx, (N, C_IN, H, W), dtype=jnp.float32)
    conv_w = 0.1 * jax.random.normal(k1, (C_FEAT, C_IN, 3, 3), dtype=jnp.float32)
    bn_scale = 1.0 + 0.05 * jax.random.normal(k2, (C_FEAT,), dtype=jnp.float32)
    bn_bias = 0.05 * jax.random.normal(k3, (C_FEAT,), dtype=jnp.float32)
    fc_w = 0.1 * jax.random.normal(k4, (NUM_CLASSES, C_FEAT), dtype=jnp.float32)  # (out, in)
    fc_b = 0.05 * jax.random.normal(k5, (NUM_CLASSES,), dtype=jnp.float32)

    y = finetune_forward(x, conv_w, bn_scale, bn_bias, fc_w, fc_b)
    y = jax.block_until_ready(y)

    y_ref = _reference(x, conv_w, bn_scale, bn_bias, fc_w, fc_b)
    assert y.shape == (N, NUM_CLASSES)
    # bf16 matmul inputs (f32 accumulation) vs pure-f32 reference
    assert jnp.allclose(y, y_ref, rtol=2e-2, atol=2e-2), "mismatch vs JAX reference"

    print("KERNEL_OK")
</pallas_src>

<mosaic_0001>
module attributes {stable_mosaic.version = 11 : i64} {
  func.func @_conv_pool_fc_kernel(%arg0: i32, %arg1: i32, %arg2: memref<1x10x18x8xbf16, #tpu.memory_space<vmem>>, %arg3: memref<72x32xbf16, #tpu.memory_space<vmem>>, %arg4: memref<1x32xf32, #tpu.memory_space<vmem>>, %arg5: memref<1x32xf32, #tpu.memory_space<vmem>>, %arg6: memref<32x128xbf16, #tpu.memory_space<vmem>>, %arg7: memref<1x128xf32, #tpu.memory_space<vmem>>, %arg8: memref<1x8x128xf32, #tpu.memory_space<vmem>>, %arg9: memref<8x32xf32, #tpu.memory_space<vmem>>) attributes {dimension_semantics = [#tpu.dimension_semantics<parallel>, #tpu.dimension_semantics<arbitrary>], iteration_bounds = array<i64: 2, 2>, scalar_prefetch = 0 : i64, scratch_operands = 1 : i64, tpu.core_type = #tpu.core_type<tc>, window_params = [{transform_indices = @transform_0, window_bounds = array<i64: 1, 10, 18, 8>}, {pipeline_mode = #tpu.pipeline_mode<synchronous>, transform_indices = @transform_1, window_bounds = array<i64: 72, 32>}, {pipeline_mode = #tpu.pipeline_mode<synchronous>, transform_indices = @transform_2, window_bounds = array<i64: 1, 32>}, {pipeline_mode = #tpu.pipeline_mode<synchronous>, transform_indices = @transform_3, window_bounds = array<i64: 1, 32>}, {pipeline_mode = #tpu.pipeline_mode<synchronous>, transform_indices = @transform_4, window_bounds = array<i64: 32, 128>}, {pipeline_mode = #tpu.pipeline_mode<synchronous>, transform_indices = @transform_5, window_bounds = array<i64: 1, 128>}, {transform_indices = @transform_6, window_bounds = array<i64: 1, 8, 128>}]} {
    %c0_i32 = arith.constant 0 : i32
    %0 = arith.cmpi eq, %arg1, %c0_i32 : i32
    %1 = arith.extui %0 : i1 to i32
    %c0_i32_0 = arith.constant 0 : i32
    %2 = arith.cmpi ne, %1, %c0_i32_0 : i32
    scf.if %2 {
      %cst_35 = arith.constant 0.000000e+00 : f32
      %67 = vector.broadcast %cst_35 : f32 to vector<8x32xf32>
      %c0_36 = arith.constant 0 : index
      %c0_37 = arith.constant 0 : index
      %68 = vector.load %arg9[%c0_36, %c0_37] : memref<8x32xf32, #tpu.memory_space<vmem>>, vector<8x32xf32>
      tpu.vector_store %arg9[%c0_36, %c0_37], %67 {strides = array<i32>} : memref<8x32xf32, #tpu.memory_space<vmem>>, vector<8x32xf32>,
    } else {
    }
    %c0 = arith.constant 0 : index
    %c0_1 = arith.constant 0 : index
    %c0_2 = arith.constant 0 : index
    %c0_3 = arith.constant 0 : index
    %3 = vector.load %arg2[%c0, %c0_1, %c0_2, %c0_3] : memref<1x10x18x8xbf16, #tpu.memory_space<vmem>>, vector<1x10x18x8xbf16>
    %4 = vector.shape_cast %3 : vector<1x10x18x8xbf16> to vector<10x18x8xbf16>
    %cst = arith.constant 0.000000e+00 : f32
    %5 = vector.broadcast %cst : f32 to vector<128x32xf32>
    %6 = vector.extract_strided_slice %4 {offsets = [0, 0, 0], sizes = [8, 16, 8], strides = [1, 1, 1]} : vector<10x18x8xbf16> to vector<8x16x8xbf16>
    %7 = vector.shape_cast %6 : vector<8x16x8xbf16> to vector<128x8xbf16>
    %c0_4 = arith.constant 0 : index
    %c0_5 = arith.constant 0 : index
    %8 = vector.load %arg3[%c0_4, %c0_5] : memref<72x32xbf16, #tpu.memory_space<vmem>>, vector<8x32xbf16>
    %cst_6 = arith.constant dense<0.000000e+00> : vector<128x32xf32>
    %9 = tpu.matmul %7, %8, %cst_6 {dimension_numbers = #tpu.dot_dimension_numbers<[1], [0], [0], [1], [0, 0, 1, 1], [], []>} : vector<128x8xbf16>, vector<8x32xbf16>, vector<128x32xf32> -> vector<128x32xf32>
    %10 = arith.addf %5, %9 : vector<128x32xf32>
    %11 = vector.extract_strided_slice %4 {offsets = [0, 1, 0], sizes = [8, 16, 8], strides = [1, 1, 1]} : vector<10x18x8xbf16> to vector<8x16x8xbf16>
    %12 = vector.shape_cast %11 : vector<8x16x8xbf16> to vector<128x8xbf16>
    %c8 = arith.constant 8 : index
    %c0_7 = arith.constant 0 : index
    %13 = vector.load %arg3[%c8, %c0_7] : memref<72x32xbf16, #tpu.memory_space<vmem>>, vector<8x32xbf16>
    %cst_8 = arith.constant dense<0.000000e+00> : vector<128x32xf32>
    %14 = tpu.matmul %12, %13, %cst_8 {dimension_numbers = #tpu.dot_dimension_numbers<[1], [0], [0], [1], [0, 0, 1, 1], [], []>} : vector<128x8xbf16>, vector<8x32xbf16>, vector<128x32xf32> -> vector<128x32xf32>
    %15 = arith.addf %10, %14 : vector<128x32xf32>
    %16 = vector.extract_strided_slice %4 {offsets = [0, 2, 0], sizes = [8, 16, 8], strides = [1, 1, 1]} : vector<10x18x8xbf16> to vector<8x16x8xbf16>
    %17 = vector.shape_cast %16 : vector<8x16x8xbf16> to vector<128x8xbf16>
    %c16 = arith.constant 16 : index
    %c0_9 = arith.constant 0 : index
    %18 = vector.load %arg3[%c16, %c0_9] : memref<72x32xbf16, #tpu.memory_space<vmem>>, vector<8x32xbf16>
    %cst_10 = arith.constant dense<0.000000e+00> : vector<128x32xf32>
    %19 = tpu.matmul %17, %18, %cst_10 {dimension_numbers = #tpu.dot_dimension_numbers<[1], [0], [0], [1], [0, 0, 1, 1], [], []>} : vector<128x8xbf16>, vector<8x32xbf16>, vector<128x32xf32> -> vector<128x32xf32>
    %20 = arith.addf %15, %19 : vector<128x32xf32>
    %21 = vector.extract_strided_slice %4 {offsets = [1, 0, 0], sizes = [8, 16, 8], strides = [1, 1, 1]} : vector<10x18x8xbf16> to vector<8x16x8xbf16>
    %22 = vector.shape_cast %21 : vector<8x16x8xbf16> to vector<128x8xbf16>
    %c24 = arith.constant 24 : index
    %c0_11 = arith.constant 0 : index
    %23 = vector.load %arg3[%c24, %c0_11] : memref<72x32xbf16, #tpu.memory_space<vmem>>, vector<8x32xbf16>
    %cst_12 = arith.constant dense<0.000000e+00> : vector<128x32xf32>
    %24 = tpu.matmul %22, %23, %cst_12 {dimension_numbers = #tpu.dot_dimension_numbers<[1], [0], [0], [1], [0, 0, 1, 1], [], []>} : vector<128x8xbf16>, vector<8x32xbf16>, vector<128x32xf32> -> vector<128x32xf32>
    %25 = arith.addf %20, %24 : vector<128x32xf32>
    %26 = vector.extract_strided_slice %4 {offsets = [1, 1, 0], sizes = [8, 16, 8], strides = [1, 1, 1]} : vector<10x18x8xbf16> to vector<8x16x8xbf16>
    %27 = vector.shape_cast %26 : vector<8x16x8xbf16> to vector<128x8xbf16>
    %c32 = arith.constant 32 : index
    %c0_13 = arith.constant 0 : index
    %28 = vector.load %arg3[%c32, %c0_13] : memref<72x32xbf16, #tpu.memory_space<vmem>>, vector<8x32xbf16>
    %cst_14 = arith.constant dense<0.000000e+00> : vector<128x32xf32>
    %29 = tpu.matmul %27, %28, %cst_14 {dimension_numbers = #tpu.dot_dimension_numbers<[1], [0], [0], [1], [0, 0, 1, 1], [], []>} : vector<128x8xbf16>, vector<8x32xbf16>, vector<128x32xf32> -> vector<128x32xf32>
    %30 = arith.addf %25, %29 : vector<128x32xf32>
    %31 = vector.extract_strided_slice %4 {offsets = [1, 2, 0], sizes = [8, 16, 8], strides = [1, 1, 1]} : vector<10x18x8xbf16> to vector<8x16x8xbf16>
    %32 = vector.shape_cast %31 : vector<8x16x8xbf16> to vector<128x8xbf16>
    %c40 = arith.constant 40 : index
    %c0_15 = arith.constant 0 : index
    %33 = vector.load %arg3[%c40, %c0_15] : memref<72x32xbf16, #tpu.memory_space<vmem>>, vector<8x32xbf16>
    %cst_16 = arith.constant dense<0.000000e+00> : vector<128x32xf32>
    %34 = tpu.matmul %32, %33, %cst_16 {dimension_numbers = #tpu.dot_dimension_numbers<[1], [0], [0], [1], [0, 0, 1, 1], [], []>} : vector<128x8xbf16>, vector<8x32xbf16>, vector<128x32xf32> -> vector<128x32xf32>
    %35 = arith.addf %30, %34 : vector<128x32xf32>
    %36 = vector.extract_strided_slice %4 {offsets = [2, 0, 0], sizes = [8, 16, 8], strides = [1, 1, 1]} : vector<10x18x8xbf16> to vector<8x16x8xbf16>
    %37 = vector.shape_cast %36 : vector<8x16x8xbf16> to vector<128x8xbf16>
    %c48 = arith.constant 48 : index
    %c0_17 = arith.constant 0 : index
    %38 = vector.load %arg3[%c48, %c0_17] : memref<72x32xbf16, #tpu.memory_space<vmem>>, vector<8x32xbf16>
    %cst_18 = arith.constant dense<0.000000e+00> : vector<128x32xf32>
    %39 = tpu.matmul %37, %38, %cst_18 {dimension_numbers = #tpu.dot_dimension_numbers<[1], [0], [0], [1], [0, 0, 1, 1], [], []>} : vector<128x8xbf16>, vector<8x32xbf16>, vector<128x32xf32> -> vector<128x32xf32>
    %40 = arith.addf %35, %39 : vector<128x32xf32>
    %41 = vector.extract_strided_slice %4 {offsets = [2, 1, 0], sizes = [8, 16, 8], strides = [1, 1, 1]} : vector<10x18x8xbf16> to vector<8x16x8xbf16>
    %42 = vector.shape_cast %41 : vector<8x16x8xbf16> to vector<128x8xbf16>
    %c56 = arith.constant 56 : index
    %c0_19 = arith.constant 0 : index
    %43 = vector.load %arg3[%c56, %c0_19] : memref<72x32xbf16, #tpu.memory_space<vmem>>, vector<8x32xbf16>
    %cst_20 = arith.constant dense<0.000000e+00> : vector<128x32xf32>
    %44 = tpu.matmul %42, %43, %cst_20 {dimension_numbers = #tpu.dot_dimension_numbers<[1], [0], [0], [1], [0, 0, 1, 1], [], []>} : vector<128x8xbf16>, vector<8x32xbf16>, vector<128x32xf32> -> vector<128x32xf32>
    %45 = arith.addf %40, %44 : vector<128x32xf32>
    %46 = vector.extract_strided_slice %4 {offsets = [2, 2, 0], sizes = [8, 16, 8], strides = [1, 1, 1]} : vector<10x18x8xbf16> to vector<8x16x8xbf16>
    %47 = vector.shape_cast %46 : vector<8x16x8xbf16> to vector<128x8xbf16>
    %c64 = arith.constant 64 : index
    %c0_21 = arith.constant 0 : index
    %48 = vector.load %arg3[%c64, %c0_21] : memref<72x32xbf16, #tpu.memory_space<vmem>>, vector<8x32xbf16>
    %cst_22 = arith.constant dense<0.000000e+00> : vector<128x32xf32>
    %49 = tpu.matmul %47, %48, %cst_22 {dimension_numbers = #tpu.dot_dimension_numbers<[1], [0], [0], [1], [0, 0, 1, 1], [], []>} : vector<128x8xbf16>, vector<8x32xbf16>, vector<128x32xf32> -> vector<128x32xf32>
    %50 = arith.addf %45, %49 : vector<128x32xf32>
    %c0_23 = arith.constant 0 : index
    %c0_24 = arith.constant 0 : index
    %51 = vector.load %arg4[%c0_23, %c0_24] : memref<1x32xf32, #tpu.memory_space<vmem>>, vector<1x32xf32>
    %52 = vector.broadcast %51 : vector<1x32xf32> to vector<128x32xf32>
    %53 = arith.mulf %50, %52 : vector<128x32xf32>
    %c0_25 = arith.constant 0 : index
    %c0_26 = arith.constant 0 : index
    %54 = vector.load %arg5[%c0_25, %c0_26] : memref<1x32xf32, #tpu.memory_space<vmem>>, vector<1x32xf32>
    %55 = vector.broadcast %54 : vector<1x32xf32> to vector<128x32xf32>
    %56 = arith.addf %53, %55 : vector<128x32xf32>
    %cst_27 = arith.constant 0.000000e+00 : f32
    %57 = vector.broadcast %cst_27 : f32 to vector<128x32xf32>
    %58 = arith.maximumf %56, %57 : vector<128x32xf32>
    %cst_28 = arith.constant 1.000000e+00 : f32
    %59 = vector.broadcast %cst_28 : f32 to vector<8x128xf32>
    %c0_29 = arith.constant 0 : index
    %c0_30 = arith.constant 0 : index
    %60 = vector.load %arg9[%c0_29, %c0_30] : memref<8x32xf32, #tpu.memory_space<vmem>>, vector<8x32xf32>
    %cst_31 = arith.constant dense<0.000000e+00> : vector<8x32xf32>
    %61 = tpu.matmul %59, %58, %cst_31 {dimension_numbers = #tpu.dot_dimension_numbers<[1], [0], [0], [1], [0, 0, 1, 1], [], []>} : vector<8x128xf32>, vector<128x32xf32>, vector<8x32xf32> -> vector<8x32xf32>
    %62 = arith.addf %60, %61 : vector<8x32xf32>
    %c0_32 = arith.constant 0 : index
    %c0_33 = arith.constant 0 : index
    %63 = vector.load %arg9[%c0_32, %c0_33] : memref<8x32xf32, #tpu.memory_space<vmem>>, vector<8x32xf32>
    tpu.vector_store %arg9[%c0_32, %c0_33], %62 {strides = array<i32>} : memref<8x32xf32, #tpu.memory_space<vmem>>, vector<8x32xf32>,
    %c1_i32 = arith.constant 1 : i32
    %64 = arith.cmpi eq, %arg1, %c1_i32 : i32
    %65 = arith.extui %64 : i1 to i32
    %c0_i32_34 = arith.constant 0 : i32
    %66 = arith.cmpi ne, %65, %c0_i32_34 : i32
    scf.if %66 {
      %c0_35 = arith.constant 0 : index
      %c0_36 = arith.constant 0 : index
      %67 = vector.load %arg9[%c0_35, %c0_36] : memref<8x32xf32, #tpu.memory_space<vmem>>, vector<8x32xf32>
      %cst_37 = arith.constant 3.906250e-03 : f32
      %68 = vector.broadcast %cst_37 : f32 to vector<8x32xf32>
      %69 = arith.mulf %67, %68 : vector<8x32xf32>
      %70 = arith.truncf %69 : vector<8x32xf32> to vector<8x32xbf16>
      %c0_38 = arith.constant 0 : index
      %c0_39 = arith.constant 0 : index
      %71 = vector.load %arg6[%c0_38, %c0_39] : memref<32x128xbf16, #tpu.memory_space<vmem>>, vector<32x128xbf16>
      %cst_40 = arith.constant dense<0.000000e+00> : vector<8x128xf32>
      %72 = tpu.matmul %70, %71, %cst_40 {dimension_numbers = #tpu.dot_dimension_numbers<[1], [0], [0], [1], [0, 0, 1, 1], [], []>} : vector<8x32xbf16>, vector<32x128xbf16>, vector<8x128xf32> -> vector<8x128xf32>
      %c0_41 = arith.constant 0 : index
      %c0_42 = arith.constant 0 : index
      %73 = vector.load %arg7[%c0_41, %c0_42] : memref<1x128xf32, #tpu.memory_space<vmem>>, vector<1x128xf32>
      %74 = vector.broadcast %73 : vector<1x128xf32> to vector<8x128xf32>
      %75 = arith.addf %72, %74 : vector<8x128xf32>
      %c0_43 = arith.constant 0 : index
      %c0_44 = arith.constant 0 : index
      %c0_45 = arith.constant 0 : index
      %76 = vector.load %arg8[%c0_43, %c0_44, %c0_45] : memref<1x8x128xf32, #tpu.memory_space<vmem>>, vector<1x8x128xf32>
      %77 = vector.shape_cast %76 : vector<1x8x128xf32> to vector<8x128xf32>
      %78 = vector.shape_cast %75 : vector<8x128xf32> to vector<1x8x128xf32>
      tpu.vector_store %arg8[%c0_43, %c0_44, %c0_45], %78 {strides = array<i32>} : memref<1x8x128xf32, #tpu.memory_space<vmem>>, vector<1x8x128xf32>,
    } else {
    }
    return
  }
  func.func @transform_0(%arg0: i32, %arg1: i32) -> (i32, i32, i32, i32) {
    %c2_i32 = arith.constant 2 : i32
    %0 = arith.muli %arg0, %c2_i32 : i32
    %1 = arith.addi %0, %arg1 : i32
    %c0_i32 = arith.constant 0 : i32
    %c0_i32_0 = arith.constant 0 : i32
    %c0_i32_1 = arith.constant 0 : i32
    %c0_i32_2 = arith.constant 0 : i32
    return %1, %c0_i32, %c0_i32_0, %c0_i32_1 : i32, i32, i32, i32
  }
  func.func @transform_1(%arg0: i32, %arg1: i32) -> (i32, i32) {
    %c0_i32 = arith.constant 0 : i32
    %c0_i32_0 = arith.constant 0 : i32
    %c0_i32_1 = arith.constant 0 : i32
    return %c0_i32, %c0_i32_0 : i32, i32
  }
  func.func @transform_2(%arg0: i32, %arg1: i32) -> (i32, i32) {
    %c0_i32 = arith.constant 0 : i32
    %c0_i32_0 = arith.constant 0 : i32
    %c0_i32_1 = arith.constant 0 : i32
    return %c0_i32, %c0_i32_0 : i32, i32
  }
  func.func @transform_3(%arg0: i32, %arg1: i32) -> (i32, i32) {
    %c0_i32 = arith.constant 0 : i32
    %c0_i32_0 = arith.constant 0 : i32
    %c0_i32_1 = arith.constant 0 : i32
    return %c0_i32, %c0_i32_0 : i32, i32
  }
  func.func @transform_4(%arg0: i32, %arg1: i32) -> (i32, i32) {
    %c0_i32 = arith.constant 0 : i32
    %c0_i32_0 = arith.constant 0 : i32
    %c0_i32_1 = arith.constant 0 : i32
    return %c0_i32, %c0_i32_0 : i32, i32
  }
  func.func @transform_5(%arg0: i32, %arg1: i32) -> (i32, i32) {
    %c0_i32 = arith.constant 0 : i32
    %c0_i32_0 = arith.constant 0 : i32
    %c0_i32_1 = arith.constant 0 : i32
    return %c0_i32, %c0_i32_0 : i32, i32
  }
  func.func @transform_6(%arg0: i32, %arg1: i32) -> (i32, i32, i32) {
    %c0_i32 = arith.constant 0 : i32
    %c0_i32_0 = arith.constant 0 : i32
    %c0_i32_1 = arith.constant 0 : i32
    return %arg0, %c0_i32, %c0_i32_0 : i32, i32, i32
  }
}

</mosaic_0001>

<bundles_post_ra>
// kernel: tpu_custom_call.1
= control target key start
LH: loop header
LB: loop body
LE: loop exit
PB: predicated region body
PF: predicated region fallthrough
CT: control target
= control target key end

     0   :  { %s3701_s0 = inlined_call_operand.vmem [shape: bf16[4,10,18,8], index: 0, kind: input, shape index: {}]   ;;  %s3702_s1 = inlined_call_operand.vmem [shape: bf16[72,32], index: 1, kind: input, shape index: {}]   ;;  %s3703_s2 = inlined_call_operand.vmem [shape: f32[1,32], index: 2, kind: input, shape index: {}]   ;;  %s3704_s3 = inlined_call_operand.vmem [shape: f32[1,32], index: 3, kind: input, shape index: {}]   ;;  %s3705_s4 = inlined_call_operand.vmem [shape: bf16[32,128], index: 4, kind: input, shape index: {}]   ;;  %s3706_s5 = inlined_call_operand.vmem [shape: f32[1,128], index: 5, kind: input, shape index: {}]   ;;  %s3707_s6 = inlined_call_operand.hbm [shape: f32[2,8,128], index: 6, kind: output, shape index: {}]  }
   0x1   :  { %3708 = sst [smem:[#allocation6_spill]] %s3701_s0 }
   0x2   :  { %11 = vsyncpa [#allocation4], 0 }
   0x3   :  { %13 = vsyncpa [#allocation4 + $0x1], 0  ;;  %s2987_s21 = smov 0   ;;  %s2989_s22 = smov 0  }
   0x4   :  { %s2991_s23 = smov 0   ;;  %s2993_s24 = smov 0  }
   0x5   :  { %s2995_s25 = smov 0   ;;  %s2997_s26 = smov 0  }
   0x6   :  { %s2999_s27 = smov 0   ;;  %s3001_s28 = smov 0  }
   0x7 LB: > { %s2156_s29 = sadd.s32 4294967295, %s2942_s28   ;;  %s2157_s30 = sadd.s32 4294967294, %s2942_s28   ;;  %s2942_s28 = sphi %s3001_s28, %s19_s28   ;;  %s2938_s27 = sphi %s2999_s27, %s3722_s27   ;;  %s2934_s26 = sphi %s2997_s26, %s3721_s26   ;;  %s2930_s25 = sphi %s2995_s25, %s3720_s25   ;;  %s2926_s24 = sphi %s2993_s24, %s3719_s24   ;;  %s2922_s23 = sphi %s2991_s23, %s3718_s23   ;;  %s2918_s22 = sphi %s2989_s22, %s3717_s22   ;;  %s2914_s21 = sphi %s2987_s21, %s3716_s21  }
   0x8   : > { %s28_s7 = sadd.s32 1, %s2934_s26  ;;  %s31_s8 = sadd.s32 1, %s2938_s27 }
   0x9   : > { %p29_p0 = scmp.ge.s32.totalorder %s28_s7, 2  ;;  %p183_p1 = scmp.ne.s32.totalorder %s2922_s23, %s2918_s22 }
   0xa   : > { %p184_p2 = scmp.eq.s32.totalorder %s2156_s29, 3  ;;  %p189_p4 = scmp.ne.s32.totalorder %s2918_s22, %s2914_s21 }
   0xb   : > { %s3724_s7 = smov (%p29_p0, %s28_s7), 0  ;;  %s3726_s8 = smov (!%p29_p0, %s31_s8), %s2938_s27 }
   0xc   : > { %p3036_p3 = por %p184_p2, %p183_p1  ;;  %p33_p5 = scmp.ge.s32.totalorder %s3726_s8, 2 }
   0xd   : > { %p190_p6 = scmp.eq.s32.totalorder %s2157_s30, 3  ;;  %p2162_p7 = scmp.ge.s32.totalorder %s2942_s28, 1 }
   0xe   : > { %p235_p8 = scmp.lt.s32.totalorder %s2942_s28, 5  ;;  %s3728_s8 = smov (%p33_p5, %s3726_s8), 0 }
   0xf   : > { %p3046_p9 = por %p190_p6, %p189_p4  ;;  %s170_s11 = ssub.s32 %s2938_s27, %s3728_s8 }
  0x10   : > { %p236_p10 = pnand %p2162_p7, %p235_p8  ;;  %s173_s12 = sadd.s32 1, %s2922_s23 }
  0x11   : > { %p171_p11 = scmp.eq.s32.totalorder %s170_s11, 0  ;;  %s264_s14 = sand.u32 (!%p236_p10), 1, %s2918_s22  }
  0x12   : > { %239 = sbr.rel (%p236_p10) target bundleno = 906 (0x38a), region = 44  ;;  %s2164_s15 = sshll.u32 (!%p236_p10), %s2930_s25, 1 }
  0x13   : > { %s3054_s13 = scalar_select %p171_p11, %s2922_s23, %s173_s12  }
  0x14   : > { %s3060_s16 = sshll.u32 (!%p236_p10), %s264_s14, 3  ;;  %s268_s17 = sadd.s32 (!%p236_p10), %s2926_s24, %s2164_s15 }
  0x15   : > { %p269_p12 = scmp.lt.s32.totalorder (!%p236_p10), %s268_s17, 3  ;;  %s3711_s0 = sld [smem:[#allocation6_spill]] (!%p236_p10) }
  0x16   : > { %s266_s30 = scalar_lea.vmem (!%p236_p10), [#allocation3], %s3060_s16  ;;  %p2166_p13 = scmp.ne.s32.totalorder (!%p236_p10), %s2926_s24, 0 }
  0x19   : > { %s3730_s17 = smov (!%p269_p12, %s268_s17), 3  ;;  %280 = sbr.rel (%p2166_p13) target bundleno = 32 (0x20), region = 48 }
  0x1a   : > { %s2757_s18 = smul.u32 120, %s3730_s17  ;;  %vm281_vm0 = vcmask (!%p2166_p13), 261120   ;;  %v2944_v0 = vmov (!%p2166_p13), 0.0  }
  0x1b   : > { %282 = vst.msk [vmem:[#allocation2] sm:$0xff] (!%p2166_p13), %vm281_vm0, %v2944_v0 }
  0x1c   : > { %s3066_s29 = scalar_lea.vmem %s3711_s0, %s2757_s18 }
  0x20 PF: > { %v509_v1 = vld [vmem:[%s3702_s1 + $0x4] sm:$0xf]  ;;  %vm559_vm1 = vcmask 1043456   ;;  %v1205_v2 = vld [vmem:[%s3702_s1 + $0x10] sm:$0xf]  ;;  %vm534_vm5 = vcmask 64512  }
  0x21   : > { %2748 = vmatprep.subr.msk.bf16.mxu1 %vm559_vm1, %v509_v1  ;;  %2752 = vmatprep.subr.msk.bf16.mxu0 %vm559_vm1, %v1205_v2  ;;  %v561_v3 = vsel %vm559_vm1, %v509_v1, 0  ;;  %v1213_v4 = vsel %vm559_vm1, %v1205_v2, 0  ;;  %v3081_v5 = vld [vmem:[%s3066_s29] sm:$0xf]  ;;  %v3084_v6 = vld [vmem:[%s3066_s29 + $0x4] sm:$0xf] }
  0x22   : > { %2392 = vmatpush3.bf16.msra.mxu1 %v561_v3  ;;  %2464 = vmatpush3.bf16.msra.mxu0 %v1213_v4  ;;  %v3087_v7 = vld [vmem:[%s3066_s29 + $0x8] sm:$0x1]  ;;  %vm314_vm2 = vsmask.f32 3328  ;;  %vm315_vm3 = vsmask.f32 7440 }
  0x23   : > { %v318_v8 = vshrl.u32 %v3081_v5, 16  ;;  %v321_v9 = vshll.u32 %v3081_v5, 16  ;;  %v327_v10 = vshll.u32 %v3084_v6, 16  ;;  %v331_v11 = vshrl.u32 %v3084_v6, 16  ;;  %v3094_v12 = vld [vmem:[%s3066_s29 + $0xc] sm:$0xf]  ;;  %vm3116_vm4 = vmor %vm314_vm2, %vm315_vm3 }
  0x24   : > { %v337_v13 = vshll.u32 %v3087_v7, 16  ;;  %v3098_v14 = vld [vmem:[%s3066_s29 + $0x10] sm:$0xf]  ;;  %v3101_v15 = vld [vmem:[%s3066_s29 + $0x14] sm:$0x1]  ;;  %v342_v21 = vshrl.u32 %v3094_v12, 16 }
  0x25   : > { %v320_v16 = vrot.slane %v318_v8, 4  ;;  %v323_v17 = vrot.slane %v321_v9, 5  ;;  %v329_v18 = vrot.slane %v327_v10, 5  ;;  %v333_v19 = vrot.slane %v331_v11, 4  ;;  %v3109_v28 = vld [vmem:[%s3066_s29 + $0x18] sm:$0xf] }
  0x26   : > { %v339_v20 = vrot.slane %v337_v13, 5  ;;  %v345_v22 = vshll.u32 %v3094_v12, 16  ;;  %v351_v23 = vshll.u32 %v3098_v14, 16  ;;  %v355_v26 = vshrl.u32 %v3098_v14, 16  ;;  %v1336_v29 = vld [vmem:[%s3702_s1 + $0x14] sm:$0xf] }
  0x27   : > { %v324_v24 = vor.u32 %v323_v17, %v320_v16  ;;  %v334_v25 = vor.u32 %v333_v19, %v329_v18  ;;  %v361_v27 = vshll.u32 %v3101_v15, 16  ;;  %v344_v31 = vrot.slane %v342_v21, 4  ;;  %v3121_v34 = vld [vmem:[%s3066_s29 + $0x1c] sm:$0xf]  ;;  %2753 = vmatprep.subr.msk.bf16.mxu0 %vm559_vm1, %v1336_v29  ;;  %v3125_v40 = vld [vmem:[%s3066_s29 + $0x20] sm:$0x1] }
  0x28   : > { %v347_v32 = vrot.slane %v345_v22, 5  ;;  %v353_v33 = vrot.slane %v351_v23, 5  ;;  %v357_v37 = vrot.slane %v355_v26, 4  ;;  %v366_v41 = vshrl.u32 %v3109_v28, 16  ;;  %v3137_v55 = vld [vmem:[%s3066_s29 + $0x24] sm:$0xf] }
  0x29   : > { %v325_v35 = vrot.slane %v324_v24, 4  ;;  %v335_v36 = vrot.slane %v334_v25, 4  ;;  %v363_v39 = vrot.slane %v361_v27, 5  ;;  %v369_v42 = vshll.u32 %v3109_v28, 16  ;;  %v3143_v58 = vld [vmem:[%s3066_s29 + $0x28] sm:$0xf] }
  0x2a   : > { %v348_v38 = vor.u32 %v347_v32, %v344_v31  ;;  %v358_v45 = vor.u32 %v357_v37, %v353_v33  ;;  %v375_v46 = vshll.u32 %v3121_v34, 16  ;;  %v368_v49 = vrot.slane %v366_v41, 4  ;;  %v3146_v59 = vld [vmem:[%s3066_s29 + $0x2c] sm:$0x1]  ;;  %v3152_v0 = vld [vmem:[%s3066_s29 + $0x30] sm:$0xf] }
  0x2b   : > { %v330_v43 = vsel %vm3116_vm4, %v325_v35, %v329_v18  ;;  %v340_v44 = vsel %vm3116_vm4, %v335_v36, %v339_v20  ;;  %v371_v50 = vrot.slane %v369_v42, 5  ;;  %v379_v53 = vshrl.u32 %v3121_v34, 16  ;;  %v3160_v13 = vld [vmem:[%s3066_s29 + $0x34] sm:$0xf]  ;;  %v3167_v19 = vld [vmem:[%s3066_s29 + $0x38] sm:$0x1] }
  0x2c   : > { %v2167_v47 = vcombine.low %v330_v43, %v340_v44  ;;  %v349_v48 = vrot.slane %v348_v38, 4  ;;  %v359_v51 = vrot.slane %v358_v45, 4  ;;  %v377_v52 = vrot.slane %v375_v46, 5  ;;  %v3173_v31 = vld [vmem:[%s3066_s29 + $0x3c] sm:$0xf]  ;;  %p2281_p0 = scmp.ne.s32.totalorder %s2926_s24, 1 }
  0x2d   : > { %v385_v54 = vshll.u32 %v3125_v40, 16  ;;  %v372_v57 = vor.u32 %v371_v50, %v368_v49  ;;  %v381_v61 = vrot.slane %v379_v53, 4  ;;  %v1344_v63 = vsel %vm559_vm1, %v1336_v29, 0  ;;  %v3180_v37 = vld [vmem:[%s3066_s29 + $0x40] sm:$0xf] }
  0x2e   : > { %2393 = vmatprep.mubr.msk.bf16.mxu1 %vm534_vm5, %v2167_v47  ;;  %v354_v56 = vsel %vm3116_vm4, %v349_v48, %v353_v33  ;;  %v364_v60 = vsel %vm3116_vm4, %v359_v51, %v363_v39  ;;  %v390_v3 = vshrl.u32 %v3137_v55, 16  ;;  %v393_v4 = vshll.u32 %v3137_v55, 16  ;;  %v3185_v43 = vld [vmem:[%s3066_s29 + $0x44] sm:$0x1]  ;;  %v3191_v48 = vld [vmem:[%s3702_s1] sm:$0xf] }
  0x2f   : > { %v387_v62 = vrot.slane %v385_v54, 5  ;;  %v2168_v1 = vcombine.low %v354_v56, %v364_v60  ;;  %v373_v2 = vrot.slane %v372_v57, 4  ;;  %v382_v8 = vor.u32 %v381_v61, %v377_v52  ;;  %v3202_v53 = vld [vmem:[%s3066_s29 + $0x48] sm:$0xf]  ;;  %v3207_v54 = vld [vmem:[%s3702_s1 + $0x18] sm:$0xf]  ;;  %2749 = vmatprep.subr.msk.bf16.mxu1 %vm559_vm1, %v3191_v48 }
  0x30   : > { %v399_v9 = vshll.u32 %v3143_v58, 16  ;;  %v403_v10 = vshrl.u32 %v3143_v58, 16  ;;  %v409_v11 = vshll.u32 %v3146_v59, 16  ;;  %v392_v17 = vrot.slane %v390_v3, 4 }
  0x31   : > { %2465 = vmatprep.mubr.msk.bf16.mxu0 %vm534_vm5, %v2168_v1  ;;  %2394 = vmatmul.mubr.msk.bf16.vlgmr.msra.gmra.mrb[0].mxu1 %vm534_vm5, %v2168_v1  ;;  %v378_v16 = vsel %vm3116_vm4, %v373_v2, %v377_v52  ;;  %v395_v18 = vrot.slane %v393_v4, 5  ;;  %v414_v20 = vshrl.u32 %v3152_v0, 16  ;;  %v383_v21 = vrot.slane %v382_v8, 4 }
  0x32   : > { %v401_v22 = vrot.slane %v399_v9, 5  ;;  %v405_v23 = vrot.slane %v403_v10, 4  ;;  %v411_v24 = vrot.slane %v409_v11, 5  ;;  %v417_v27 = vshll.u32 %v3152_v0, 16 }
  0x33   : > { %v396_v25 = vor.u32 %v395_v18, %v392_v17  ;;  %v416_v26 = vrot.slane %v414_v20, 4  ;;  %v423_v29 = vshll.u32 %v3160_v13, 16  ;;  %v388_v32 = vsel %vm3116_vm4, %v383_v21, %v387_v62  ;;  %v3213_v62 = vld [vmem:[%s3066_s29 + $0x4c] sm:$0xf]  ;;  %v3230_v17 = vld [vmem:[%s3066_s29 + $0x50] sm:$0x1] }
  0x34   : > { %v406_v33 = vor.u32 %v405_v23, %v401_v22  ;;  %v427_v35 = vshrl.u32 %v3160_v13, 16  ;;  %v433_v36 = vshll.u32 %v3167_v19, 16  ;;  %v3182_v38 = vcombine.low %v378_v16, %v388_v32  ;;  %v3235_v21 = vld [vmem:[%s3066_s29 + $0x54] sm:$0xf] }
  0x35   : > { %v397_v39 = vrot.slane %v396_v25, 4  ;;  %v419_v41 = vrot.slane %v417_v27, 5  ;;  %v425_v42 = vrot.slane %v423_v29, 5  ;;  %v438_v47 = vshrl.u32 %v3173_v31, 16 }
  0x36   : > { %v407_v44 = vrot.slane %v406_v33, 4  ;;  %v429_v45 = vrot.slane %v427_v35, 4  ;;  %v435_v46 = vrot.slane %v433_v36, 5  ;;  %2466 = vmatmul.mubr.msk.bf16.vlgmr.msra.gmra.mrb[0].mxu0 %vm534_vm5, %v3182_v38  ;;  %2397 = vmatprep.mubr.msk.bf16.mxu1 %vm534_vm5, %v3182_v38  ;;  %v441_v51 = vshll.u32 %v3173_v31, 16 }
  0x37   : > { %v402_v49 = vsel %vm3116_vm4, %v397_v39, %v401_v22  ;;  %v420_v50 = vor.u32 %v419_v41, %v416_v26  ;;  %v447_v52 = vshll.u32 %v3180_v37, 16  ;;  %2482 = vmatpush3.bf16.msra.mxu0 %v1344_v63  ;;  %v440_v60 = vrot.slane %v438_v47, 4  ;;  %v3240_v26 = vld [vmem:[%s3066_s29 + $0x58] sm:$0xf] }
  0x38   : > { %v412_v56 = vsel %vm3116_vm4, %v407_v44, %v411_v24  ;;  %v430_v57 = vor.u32 %v429_v45, %v425_v42  ;;  %v451_v61 = vshrl.u32 %v3180_v37, 16  ;;  %v443_v3 = vrot.slane %v441_v51, 5  ;;  %2754 = vmatprep.subr.msk.bf16.mxu0 %vm559_vm1, %v3207_v54  ;;  %v3254_v45 = vld [vmem:[%s3066_s29 + $0x5c] sm:$0x1] }
  0x39   : > { %v3217_v1 = vcombine.low %v402_v49, %v412_v56  ;;  %v421_v2 = vrot.slane %v420_v50, 4  ;;  %v449_v4 = vrot.slane %v447_v52, 5  ;;  %v457_v9 = vshll.u32 %v3185_v43, 16  ;;  %v3259_v49 = vld [vmem:[%s3066_s29 + $0x60] sm:$0xf] }
  0x3a   : > { %v431_v63 = vrot.slane %v430_v57, 4  ;;  %v453_v8 = vrot.slane %v451_v61, 4  ;;  %v462_v10 = vshrl.u32 %v3202_v53, 16  ;;  %v444_v16 = vor.u32 %v443_v3, %v440_v60  ;;  %v3264_v57 = vld [vmem:[%s3066_s29 + $0x64] sm:$0xf] }
  0x3b   : > { %2469 = vmatprep.mubr.msk.bf16.mxu0 %vm534_vm5, %v3217_v1  ;;  %2398 = vmatmul.mubr.msk.bf16.gmra.mrb[4].mxu1 %vm534_vm5, %v3217_v1  ;;  %v426_v11 = vsel %vm3116_vm4, %v421_v2, %v425_v42  ;;  %v465_v18 = vshll.u32 %v3202_v53, 16  ;;  %v471_v20 = vshll.u32 %v3213_v62, 16  ;;  %v459_v24 = vrot.slane %v457_v9, 5 }
  0x3c   : > { %v436_v22 = vsel %vm3116_vm4, %v431_v63, %v435_v46  ;;  %v454_v23 = vor.u32 %v453_v8, %v449_v4  ;;  %v464_v25 = vrot.slane %v462_v10, 4  ;;  %v445_v29 = vrot.slane %v444_v16, 4  ;;  %v3278_v16 = vld [vmem:[%s3066_s29 + $0x68] sm:$0x1] }
  0x3d   : > { %v3242_v27 = vcombine.low %v426_v11, %v436_v22  ;;  %v467_v32 = vrot.slane %v465_v18, 5  ;;  %v473_v33 = vrot.slane %v471_v20, 5  ;;  %v475_v36 = vshrl.u32 %v3213_v62, 16 }
  0x3e   : > { %v455_v35 = vrot.slane %v454_v23, 4  ;;  %v481_v39 = vshll.u32 %v3230_v17, 16  ;;  %v486_v41 = vshrl.u32 %v3235_v21, 16  ;;  %v450_v42 = vsel %vm3116_vm4, %v445_v29, %v449_v4 }
  0x3f   : > { %2470 = vmatmul.mubr.msk.bf16.gmra.mrb[4].mxu0 %vm534_vm5, %v3242_v27  ;;  %2401 = vmatprep.mubr.msk.bf16.mxu1 %vm534_vm5, %v3242_v27  ;;  %v468_v44 = vor.u32 %v467_v32, %v464_v25  ;;  %v489_v46 = vshll.u32 %v3235_v21, 16  ;;  %v495_v47 = vshll.u32 %v3240_v26, 16  ;;  %v477_v51 = vrot.slane %v475_v36, 4 }
  0x40   : > { %v460_v50 = vsel %vm3116_vm4, %v455_v35, %v459_v24  ;;  %v483_v52 = vrot.slane %v481_v39, 5  ;;  %v488_v56 = vrot.slane %v486_v41, 4  ;;  %v499_v63 = vshrl.u32 %v3240_v26, 16 }
  0x41   : > { %v3266_v60 = vcombine.low %v450_v42, %v460_v50  ;;  %v469_v61 = vrot.slane %v468_v44, 4  ;;  %v491_v2 = vrot.slane %v489_v46, 5  ;;  %v497_v3 = vrot.slane %v495_v47, 5 }
  0x42   : > { %v478_v4 = vor.u32 %v477_v51, %v473_v33  ;;  %v505_v8 = vshll.u32 %v3254_v45, 16  ;;  %v1182_v9 = vshrl.u32 %v3259_v49, 16  ;;  %v1185_v18 = vshll.u32 %v3259_v49, 16 }
  0x43   : > { %2473 = vmatprep.mubr.msk.bf16.mxu0 %vm534_vm5, %v3266_v60  ;;  %2402 = vmatmul.mubr.msk.bf16.gmra.mrb[8].mxu1 %vm534_vm5, %v3266_v60  ;;  %v474_v10 = vsel %vm3116_vm4, %v469_v61, %v473_v33  ;;  %v492_v11 = vor.u32 %v491_v2, %v488_v56  ;;  %v1191_v20 = vshll.u32 %v3264_v57, 16  ;;  %v501_v23 = vrot.slane %v499_v63, 4  ;;  %v3286_v33 = vld [vmem:[%s3702_s1 + $0x8] sm:$0xf] }
  0x44   : > { %v479_v22 = vrot.slane %v478_v4, 4  ;;  %v507_v24 = vrot.slane %v505_v8, 5  ;;  %v1184_v25 = vrot.slane %v1182_v9, 4  ;;  %v1187_v32 = vrot.slane %v1185_v18, 5 }
  0x45   : > { %v493_v29 = vrot.slane %v492_v11, 4  ;;  %v1193_v35 = vrot.slane %v1191_v20, 5  ;;  %v1195_v36 = vshrl.u32 %v3264_v57, 16  ;;  %v502_v41 = vor.u32 %v501_v23, %v497_v3 }
  0x46   : > { %v484_v39 = vsel %vm3116_vm4, %v479_v22, %v483_v52  ;;  %v1201_v42 = vshll.u32 %v3278_v16, 16  ;;  %v725_v44 = vsel %vm559_vm1, %v3191_v48, 0  ;;  %v1188_v50 = vor.u32 %v1187_v32, %v1184_v25 }
  0x47   : > { %v3293_v46 = vcombine.low %v474_v10, %v484_v39  ;;  %v498_v47 = vsel %vm3116_vm4, %v493_v29, %v497_v3  ;;  %v1197_v51 = vrot.slane %v1195_v36, 4  ;;  %2410 = vmatpush3.bf16.msra.mxu1 %v725_v44  ;;  %v503_v56 = vrot.slane %v502_v41, 4 }
  0x48   : > { %v1203_v61 = vrot.slane %v1201_v42, 5  ;;  %vm832_vm6 = vcmask 1042432   ;;  %vm833_vm7 = vcmask 1046532   ;;  %2750 = vmatprep.subr.msk.bf16.mxu1 %vm559_vm1, %v3286_v33  ;;  %v1189_v48 = vrot.slane %v1188_v50, 4 }
  0x49   : > { %2474 = vmatmul.mubr.msk.bf16.gmra.mrb[8].mxu0 %vm534_vm5, %v3293_v46  ;;  %2405 = vmatprep.mubr.msk.bf16.mxu1 %vm534_vm5, %v3293_v46  ;;  %v1198_v52 = vor.u32 %v1197_v51, %v1193_v35  ;;  %vm3303_vm8 = vmor %vm832_vm6, %vm833_vm7  ;;  %v2200_v3 = vrot.slane %v3094_v12, 9  ;;  %v844_v4 = vrot.slane %v3098_v14, 5  ;;  %v847_v63 = vrot.slane %v3101_v15, 5 }
  0x4a   : > { %v851_v8 = vrot.slane %v3121_v34, 5  ;;  %v508_v9 = vsel %vm3116_vm4, %v503_v56, %v507_v24  ;;  %v2183_v10 = vcombine.low %v3081_v5, %v3084_v6  ;;  %v1194_v18 = vsel %vm3116_vm4, %v1189_v48, %v1193_v35 }
  0x4b   : > { %v3315_v11 = vcombine.low %v498_v47, %v508_v9  ;;  %v1199_v20 = vrot.slane %v1198_v52, 4  ;;  %v845_v22 = vsel %vm3303_vm8, %v2200_v3, %v844_v4  ;;  %v846_v23 = vrot.slane %v844_v4, 4 }
  0x4c   : > { %v854_v15 = vrot.slane %v3125_v40, 5  ;;  %v858_v25 = vrot.slane %v3143_v58, 5  ;;  %v2201_v40 = vrot.slane %v3109_v28, 9  ;;  %v853_v35 = vrot.slane %v851_v8, 4 }
  0x4d   : > { %2477 = vmatprep.mubr.msk.bf16.mxu0 %vm534_vm5, %v3315_v11  ;;  %2406 = vmatmul.mubr.msk.bf16.gmra.mrb[12].mxu1 %vm534_vm5, %v3315_v11  ;;  %v1204_v24 = vsel %vm3116_vm4, %v1199_v20, %v1203_v61  ;;  %v848_v32 = vsel %vm3303_vm8, %v846_v23, %v847_v63  ;;  %v2202_v39 = vrot.slane %v3137_v55, 9  ;;  %v861_v42 = vrot.slane %v3146_v59, 5 }
  0x4e   : > { %v3329_v29 = vcombine.low %v1194_v18, %v1204_v24  ;;  %2411 = vmatprep.mubr.msk.bf16.mxu1 %vm534_vm5, %v2183_v10  ;;  %v3335_v36 = vcombine.low %v845_v22, %v848_v32  ;;  %v860_v41 = vrot.slane %v858_v25, 4  ;;  %v3341_v44 = vcombine.low %v3094_v12, %v3098_v14  ;;  %v3381_v18 = vld [vmem:[%s3702_s1 + $0x1c] sm:$0xf] }
  0x4f   : > { %v852_v47 = vsel %vm3303_vm8, %v2201_v40, %v851_v8  ;;  %v855_v50 = vsel %vm3303_vm8, %v853_v35, %v854_v15  ;;  %v3353_v51 = vcombine.low %v3109_v28, %v3121_v34  ;;  %v865_v59 = vrot.slane %v3160_v13, 5 }
  0x50   : > { %v859_v12 = vsel %vm3303_vm8, %v2202_v39, %v858_v25  ;;  %v862_v14 = vsel %vm3303_vm8, %v860_v41, %v861_v42  ;;  %v872_v56 = vrot.slane %v3180_v37, 5  ;;  %v3363_v61 = vcombine.low %v852_v47, %v855_v50 }
  0x51   : > { %2478 = vmatmul.mubr.msk.bf16.gmra.mrb[12].mxu0 %vm534_vm5, %v3329_v29  ;;  %v2203_v48 = vrot.slane %v3152_v0, 9  ;;  %v3368_v28 = vcombine.low %v859_v12, %v862_v14  ;;  %v867_v34 = vrot.slane %v865_v59, 4  ;;  %v868_v52 = vrot.slane %v3167_v19, 5  ;;  %v1056_v19 = vld [vmem:[%s3702_s1 + $0xc] sm:$0xf] }
  0x52   : > { %2483 = vmatprep.mubr.msk.bf16.mxu0 %vm534_vm5, %v3335_v36  ;;  %v1469_v3 = vsel %vm559_vm1, %v3207_v54, 0  ;;  %v2204_v4 = vrot.slane %v3173_v31, 9  ;;  %v874_v63 = vrot.slane %v872_v56, 4  ;;  %v875_v8 = vrot.slane %v3185_v43, 5 }
  0x53   : > { %v840_v9 = vrot.slane %v3087_v7, 5  ;;  %v941_v10 = vsel %vm559_vm1, %v3286_v33, 0  ;;  %v3390_v43 = vcombine.low %v3137_v55, %v3143_v58  ;;  %v866_v7 = vsel %vm3303_vm8, %v2203_v48, %v865_v59 }
  0x54   : > { %v3396_v54 = vcombine.low %v3152_v0, %v3160_v13  ;;  %v2199_v33 = vrot.slane %v3081_v5, 9  ;;  %v869_v20 = vsel %vm3303_vm8, %v867_v34, %v868_v52  ;;  %v879_v55 = vrot.slane %v3213_v62, 5 }
  0x55   : > { %2412 = vmatmul.mubr.msk.bf16.vlgmr.msra.gmra.mrb[0].mxu1 %vm534_vm5, %v3341_v44  ;;  %v837_v58 = vrot.slane %v3084_v6, 5  ;;  %v3407_v22 = vcombine.low %v3259_v49, %v3264_v57  ;;  %v873_v0 = vsel %vm3303_vm8, %v2204_v4, %v872_v56  ;;  %v876_v5 = vsel %vm3303_vm8, %v874_v63, %v875_v8 }
  0x56   : > { %2415 = vmatprep.mubr.msk.bf16.mxu1 %vm534_vm5, %v3353_v51  ;;  %2428 = vmatpush3.bf16.msra.mxu1 %v941_v10  ;;  %v886_v13 = vrot.slane %v3240_v26, 5  ;;  %v3421_v15 = vcombine.low %v866_v7, %v869_v20  ;;  %v2205_v24 = vrot.slane %v3202_v53, 9  ;;  %v3426_v25 = vcombine.low %v873_v0, %v876_v5 }
  0x57   : > { %2751 = vmatprep.subr.msk.bf16.mxu1 %vm559_vm1, %v1056_v19  ;;  %v838_v6 = vsel %vm3303_vm8, %v2199_v33, %v837_v58  ;;  %v839_v23 = vrot.slane %v837_v58, 4  ;;  %v881_v32 = vrot.slane %v879_v55, 4  ;;  %v882_v40 = vrot.slane %v3230_v17, 5 }
  0x58   : > { %v2206_v39 = vrot.slane %v3235_v21, 9  ;;  %v888_v41 = vrot.slane %v886_v13, 4  ;;  %v889_v42 = vrot.slane %v3254_v45, 5  ;;  %v2188_v50 = vcombine.low %v3173_v31, %v3180_v37 }
  0x59   : > { %2484 = vmatmul.mubr.msk.bf16.vlgmr.msra.gmra.mrb[0].mxu0 %vm534_vm5, %v3363_v61  ;;  %v841_v35 = vsel %vm3303_vm8, %v839_v23, %v840_v9  ;;  %v880_v17 = vsel %vm3303_vm8, %v2205_v24, %v879_v55  ;;  %v883_v59 = vsel %vm3303_vm8, %v881_v32, %v882_v40  ;;  %v3445_v12 = vcombine.low %v3202_v53, %v3213_v62 }
  0x5a   : > { %2500 = vmatpush3.bf16.msra.mxu0 %v1469_v3  ;;  %2487 = vmatprep.mubr.msk.bf16.mxu0 %vm534_vm5, %v3368_v28  ;;  %v2207_v47 = vcombine.low %v838_v6, %v841_v35  ;;  %v1331_v45 = vrot.slane %v3264_v57, 5  ;;  %v887_v14 = vsel %vm3303_vm8, %v2206_v39, %v886_v13  ;;  %v890_v31 = vsel %vm3303_vm8, %v888_v41, %v889_v42  ;;  %v311_v3 = vld [vmem:[%s3066_s29 + $0x70] sm:$0xf] }
  0x5b   : > { %2755 = vmatprep.subr.msk.bf16.mxu0 %vm559_vm1, %v3381_v18  ;;  %v3453_v37 = vcombine.low %v880_v17, %v883_v59  ;;  %v3457_v56 = vcombine.low %v887_v14, %v890_v31  ;;  %v2241_v53 = vrot.slane %v3259_v49, 9  ;;  %v1334_v57 = vrot.slane %v3278_v16, 5  ;;  %v1739_v16 = vld [vmem:[%s3702_s1 + $0x20] sm:$0xf] }
  0x5c   : > { %v1333_v62 = vrot.slane %v1331_v45, 4  ;;  %v2190_v48 = vcombine.low %v3235_v21, %v3240_v26  ;;  %v1066_v21 = vsel %vm559_vm1, %v1056_v19, 0  ;;  %v1616_v26 = vsel %vm559_vm1, %v3381_v18, 0  ;;  %v3586_v31 = vld [vmem:[%s3704_s3] ss:$0 sm:$0xff] }
  0x5d   : > { %2416 = vmatmul.mubr.msk.bf16.gmra.mrb[4].mxu1 %vm534_vm5, %v3390_v43  ;;  %v1332_v34 = vsel %vm3303_vm8, %v2241_v53, %v1331_v45  ;;  %v1747_v63 = vsel %vm559_vm1, %v1739_v16, 0  ;;  %v1734_v30 = vrot.slane %v311_v3, 5  ;;  %v2945_v0 = vmov 0.0|0.0  }
  0x5e   : > { %2419 = vmatprep.mubr.msk.bf16.mxu1 %vm534_vm5, %v3396_v54  ;;  %v1335_v52 = vsel %vm3303_vm8, %v1333_v62, %v1334_v57  ;;  %vm2946_vm9 = vmmov 0   ;;  %v2947_v5 = vmov 0.0   ;;  %vm1996_vm10 = vcmask 261120  }
  0x5f   : > { %v3472_v49 = vcombine.low %v1332_v34, %v1335_v52  ;;  %vm2950_vm11 = vmmov (!%p2281_p0), 0  }
  0x61   : > { %2488 = vmatmul.mubr.msk.bf16.gmra.mrb[4].mxu0 %vm534_vm5, %v3421_v15 }
  0x62   : > { %2491 = vmatprep.mubr.msk.bf16.mxu0 %vm534_vm5, %v3426_v25 }
  0x65   : > { %2420 = vmatmul.mubr.msk.bf16.gmra.mrb[8].mxu1 %vm534_vm5, %v2188_v50 }
  0x66   : > { %2423 = vmatprep.mubr.msk.bf16.mxu1 %vm534_vm5, %v3445_v12 }
  0x69   : > { %2492 = vmatmul.mubr.msk.bf16.gmra.mrb[8].mxu0 %vm534_vm5, %v3453_v37 }
  0x6a   : > { %2495 = vmatprep.mubr.msk.bf16.mxu0 %vm534_vm5, %v3457_v56 }
  0x6d   : > { %2424 = vmatmul.mubr.msk.bf16.gmra.mrb[12].mxu1 %vm534_vm5, %v2190_v48 }
  0x6e   : > { %2429 = vmatprep.mubr.msk.bf16.mxu1 %vm534_vm5, %v2207_v47 }
  0x71   : > { %2496 = vmatmul.mubr.msk.bf16.gmra.mrb[12].mxu0 %vm534_vm5, %v3472_v49 }
  0x72   : > { %2501 = vmatprep.mubr.msk.bf16.mxu0 %vm534_vm5, %v3353_v51 }
  0x75   : > { %2430 = vmatmul.mubr.msk.bf16.vlgmr.msra.gmra.mrb[0].mxu1 %vm534_vm5, %v3335_v36  ;;  %v310_v36 = vld [vmem:[%s3066_s29 + $0x6c] sm:$0xf] }
  0x76   : > { %2433 = vmatprep.mubr.msk.bf16.mxu1 %vm534_vm5, %v3363_v61  ;;  %2446 = vmatpush3.bf16.msra.mxu1 %v1066_v21  ;;  %v2251_v4 = vcombine.low %v310_v36, %v311_v3  ;;  %v1585_v8 = vshrl.u32 %v310_v36, 16  ;;  %v1588_v9 = vshll.u32 %v310_v36, 16 }
  0x77   : > { %2596 = vmatprep.subr.bf16.mxu1 %v2945_v0 }
  0x78   : > { %v1590_v10 = vrot.slane %v1588_v9, 5 }
  0x79   : > { %2502 = vmatmul.mubr.msk.bf16.vlgmr.msra.gmra.mrb[0].mxu0 %vm534_vm5, %v3390_v43 }
  0x7a   : > { %2518 = vmatpush3.bf16.msra.mxu0 %v1616_v26  ;;  %2505 = vmatprep.mubr.msk.bf16.mxu0 %vm534_vm5, %v3396_v54 }
  0x7b   : > { %2756 = vmatprep.subr.msk.bf16.mxu0 %vm559_vm1, %v1739_v16 }
  0x7d   : > { %2434 = vmatmul.mubr.msk.bf16.gmra.mrb[4].mxu1 %vm534_vm5, %v3368_v28 }
  0x7e   : > { %2437 = vmatprep.mubr.msk.bf16.mxu1 %vm534_vm5, %v3421_v15 }
  0x81   : > { %2506 = vmatmul.mubr.msk.bf16.gmra.mrb[4].mxu0 %vm534_vm5, %v2188_v50 }
  0x82   : > { %2509 = vmatprep.mubr.msk.bf16.mxu0 %vm534_vm5, %v3445_v12 }
  0x85   : > { %2438 = vmatmul.mubr.msk.bf16.gmra.mrb[8].mxu1 %vm534_vm5, %v3426_v25 }
  0x86   : > { %2441 = vmatprep.mubr.msk.bf16.mxu1 %vm534_vm5, %v3453_v37 }
  0x89   : > { %2510 = vmatmul.mubr.msk.bf16.gmra.mrb[8].mxu0 %vm534_vm5, %v2190_v48 }
  0x8a   : > { %2513 = vmatprep.mubr.msk.bf16.mxu0 %vm534_vm5, %v3407_v22 }
  0x8d   : > { %2442 = vmatmul.mubr.msk.bf16.gmra.mrb[12].mxu1 %vm534_vm5, %v3457_v56 }
  0x8e   : > { %2447 = vmatprep.mubr.msk.bf16.mxu1 %vm534_vm5, %v3341_v44  ;;  %v1598_v44 = vshrl.u32 %v311_v3, 16 }
  0x90   : > { %v1600_v19 = vrot.slane %v1598_v44, 4 }
  0x91   : > { %2514 = vmatmul.mubr.msk.bf16.gmra.mrb[12].mxu0 %vm534_vm5, %v2251_v4 }
  0x92   : > { %2519 = vmatprep.mubr.msk.bf16.mxu0 %vm534_vm5, %v3182_v38  ;;  %v1594_v38 = vshll.u32 %v311_v3, 16 }
  0x94   : > { %v1596_v18 = vrot.slane %v1594_v38, 5 }
  0x95   : > { %2448 = vmatmul.mubr.msk.bf16.vlgmr.msra.gmra.mrb[0].mxu1 %vm534_vm5, %v3353_v51  ;;  %v1587_v51 = vrot.slane %v1585_v8, 4 }
  0x96   : > { %2451 = vmatprep.mubr.msk.bf16.mxu1 %vm534_vm5, %v3390_v43  ;;  %v312_v43 = vld [vmem:[%s3066_s29 + $0x74] sm:$0x1]  ;;  %v1601_v7 = vor.u32 %v1600_v19, %v1596_v18 }
  0x97   : > { %v1737_v58 = vrot.slane %v312_v43, 5 }
  0x98   : > { %v1602_v33 = vrot.slane %v1601_v7, 4 }
  0x99   : > { %2520 = vmatmul.mubr.msk.bf16.vlgmr.msra.gmra.mrb[0].mxu0 %vm534_vm5, %v3217_v1  ;;  %v1591_v1 = vor.u32 %v1590_v10, %v1587_v51 }
  0x9a   : > { %2536 = vmatpush3.bf16.msra.mxu0 %v1747_v63  ;;  %2523 = vmatprep.mubr.msk.bf16.mxu0 %vm534_vm5, %v3242_v27  ;;  %v1604_v27 = vshll.u32 %v312_v43, 16 }
  0x9c   : > { %v1606_v20 = vrot.slane %v1604_v27, 5 }
  0x9d   : > { %2452 = vmatmul.mubr.msk.bf16.gmra.mrb[4].mxu1 %vm534_vm5, %v3396_v54  ;;  %v1592_v54 = vrot.slane %v1591_v1, 4 }
  0x9e   : > { %2455 = vmatprep.mubr.msk.bf16.mxu1 %vm534_vm5, %v2188_v50 }
  0xa1   : > { %2524 = vmatmul.mubr.msk.bf16.gmra.mrb[4].mxu0 %vm534_vm5, %v3266_v60  ;;  %v1597_v60 = vsel %vm3116_vm4, %v1592_v54, %v1596_v18 }
  0xa2   : > { %2527 = vmatprep.mubr.msk.bf16.mxu0 %vm534_vm5, %v3293_v46  ;;  %v1607_v46 = vsel %vm3116_vm4, %v1602_v33, %v1606_v20 }
  0xa3   : > { %v2260_v55 = vcombine.low %v1597_v60, %v1607_v46 }
  0xa5   : > { %2456 = vmatmul.mubr.msk.bf16.gmra.mrb[8].mxu1 %vm534_vm5, %v3445_v12  ;;  %v3581_v12 = vld [vmem:[%s3703_s2] ss:$0 sm:$0xff] }
  0xa6   : > { %2459 = vmatprep.mubr.msk.bf16.mxu1 %vm534_vm5, %v2190_v48 }
  0xa9   : > { %2528 = vmatmul.mubr.msk.bf16.gmra.mrb[8].mxu0 %vm534_vm5, %v3315_v11  ;;  %v2269_v11 = vrot.slane %v310_v36, 9 }
  0xaa   : > { %2531 = vmatprep.mubr.msk.bf16.mxu0 %vm534_vm5, %v3329_v29  ;;  %v1736_v29 = vrot.slane %v1734_v30, 4 }
  0xad   : > { %2460 = vmatmul.mubr.msk.bf16.gmra.mrb[12].mxu1 %vm534_vm5, %v3407_v22 }
  0xae   : > { %2585 = vmatprep.mubr.msk.f32.mxu1 %vm2946_vm9, %v2947_v5 }
  0xb1   : > { %2532 = vmatmul.mubr.msk.bf16.gmra.mrb[12].mxu0 %vm534_vm5, %v2260_v55 }
  0xb2   : > { %2537 = vmatprep.mubr.msk.bf16.mxu0 %vm534_vm5, %v3363_v61  ;;  %v1735_v61 = vsel %vm3303_vm8, %v2269_v11, %v1734_v30 }
  0xb9   : > { %2538 = vmatmul.mubr.msk.bf16.vlgmr.msra.gmra.mrb[0].mxu0 %vm534_vm5, %v3368_v28  ;;  %v1738_v28 = vsel %vm3303_vm8, %v1736_v29, %v1737_v58 }
  0xba   : > { %2541 = vmatprep.mubr.msk.bf16.mxu0 %vm534_vm5, %v3421_v15  ;;  %v2270_v22 = vcombine.low %v1735_v61, %v1738_v28 }
  0xc1   : > { %2542 = vmatmul.mubr.msk.bf16.gmra.mrb[4].mxu0 %vm534_vm5, %v3426_v25 }
  0xc2   : > { %2545 = vmatprep.mubr.msk.bf16.mxu0 %vm534_vm5, %v3453_v37 }
  0xc9   : > { %2546 = vmatmul.mubr.msk.bf16.gmra.mrb[8].mxu0 %vm534_vm5, %v3457_v56 }
  0xca   : > { %2549 = vmatprep.mubr.msk.bf16.mxu0 %vm534_vm5, %v3472_v49 }
  0xd1   : > { %2550 = vmatmul.mubr.msk.bf16.gmra.mrb[12].mxu0 %vm534_vm5, %v2270_v22 }
 0x168   : > { %v2449_v13 = vpop.f32.mrb[0].mxu1 }
 0x169   : > { %v1102_v6 = vpop.f32.mrb[1].mxu1 }
 0x16a   : > { %v2450_v23 = vpop.f32.mrb[2].mxu1 }
 0x16b   : > { %v1105_v15 = vpop.f32.mrb[3].mxu1 }
 0x170   : > { %v2453_v24 = vpop.f32.mrb[4].mxu1 }
 0x171   : > { %v1118_v25 = vpop.f32.mrb[5].mxu1 }
 0x172   : > { %v2454_v32 = vpop.f32.mrb[6].mxu1 }
 0x173   : > { %v1121_v40 = vpop.f32.mrb[7].mxu1 }
 0x178   : > { %v2457_v35 = vpop.f32.mrb[8].mxu1 }
 0x179   : > { %v1134_v2 = vpop.f32.mrb[9].mxu1 }
 0x17a   : > { %v2458_v39 = vpop.f32.mrb[10].mxu1 }
 0x17b   : > { %v3568_v41 = vpop.f32.mrb[11].mxu1 }
 0x180   : > { %v3570_v42 = vpop.f32.mrb[12].mxu1 }
 0x181   : > { %v3572_v47 = vpop.f32.mrb[13].mxu1 }
 0x182   : > { %v3574_v50 = vpop.f32.mrb[14].mxu1 }
 0x183   : > { %v3576_v17 = vpop.f32.mrb[15].mxu1 }
 0x18c   : > { %v2539_v59 = vpop.f32.mrb[0].mxu0 }
 0x18d   : > { %v2620_v45 = vadd.f32 %v2539_v59, %v2449_v13  ;;  %v1783_v14 = vpop.f32.mrb[1].mxu0 }
 0x18e   : > { %v2621_v37 = vadd.f32 %v1783_v14, %v1102_v6  ;;  %v2540_v56 = vpop.f32.mrb[2].mxu0 }
 0x18f   : > { %v1871_v53 = vmul.f32 %v2620_v45, %v3581_v12  ;;  %v2622_v62 = vadd.f32 %v2540_v56, %v2450_v23  ;;  %v1786_v57 = vpop.f32.mrb[3].mxu0 }
 0x190   : > { %v1869_v48 = vmul.f32 %v2621_v37, %v3581_v12  ;;  %v2623_v34 = vadd.f32 %v1786_v57, %v1105_v15 }
 0x191   : > { %v1894_v52 = vadd.f32 %v3586_v31, %v1871_v53  ;;  %v1872_v49 = vmul.f32 %v2622_v62, %v3581_v12 }
 0x192   : > { %v1892_v21 = vadd.f32 %v3586_v31, %v1869_v48  ;;  %v1870_v26 = vmul.f32 %v2623_v34, %v3581_v12 }
 0x193   : > { %v1895_v16 = vadd.f32 %v3586_v31, %v1872_v49  ;;  %v1910_v4 = vmax.f32 %v1894_v52, 0.0 }
 0x194   : > { %v1893_v36 = vadd.f32 %v3586_v31, %v1870_v26  ;;  %v2543_v3 = vpop.f32.mrb[4].mxu0  ;;  %v1908_v44 = vmax.f32 %v1892_v21, 0.0 }
 0x195   : > { %v1911_v63 = vmax.f32 %v1895_v16, 0.0  ;;  %v2624_v8 = vadd.f32 %v2543_v3, %v2453_v24  ;;  %v1799_v9 = vpop.f32.mrb[5].mxu0 }
 0x196   : > { %v1909_v38 = vmax.f32 %v1893_v36, 0.0  ;;  %v2625_v51 = vadd.f32 %v1799_v9, %v1118_v25  ;;  %v2544_v10 = vpop.f32.mrb[6].mxu0 }
 0x197   : > { %v2600_v18 = vpack.c.bf16 %v1911_v63, %v1910_v4  ;;  %v1875_v19 = vmul.f32 %v2624_v8, %v3581_v12  ;;  %v2626_v43 = vadd.f32 %v2544_v10, %v2454_v32  ;;  %v1802_v1 = vpop.f32.mrb[7].mxu0 }
 0x198   : > { %v2597_v7 = vpack.c.bf16 %v1909_v38, %v1908_v44  ;;  %v1873_v27 = vmul.f32 %v2625_v51, %v3581_v12  ;;  %v2627_v54 = vadd.f32 %v1802_v1, %v1121_v40 }
 0x199   : > { %v1898_v33 = vadd.f32 %v3586_v31, %v1875_v19  ;;  %v1876_v20 = vmul.f32 %v2626_v43, %v3581_v12  ;;  %v1924_v43 = vld [vmem:[#allocation2] sm:$0xff] }
 0x19a   : > { %v1896_v60 = vadd.f32 %v3586_v31, %v1873_v27  ;;  %v1874_v46 = vmul.f32 %v2627_v54, %v3581_v12  ;;  %2598 = vmatpush3.bf16.msra.mxu1 %v2597_v7  ;;  %v2846_v27 = vld [vmem:[%s3705_s4] sm:$0xff] (!%p2281_p0)   ;;  %v2949_v54 = vmov (!%p2281_p0), 0.0  }
 0x19b   : > { %v1899_v55 = vadd.f32 %v3586_v31, %v1876_v20  ;;  %2599 = vmatprep.subr.bf16.mxu1 %v2945_v0  ;;  %v1914_v29 = vmax.f32 %v1898_v33, 0.0  ;;  %2588 = vmatprep.subr.bf16.mxu0 (!%p2281_p0), %v2949_v54 }
 0x19c   : > { %v1897_v30 = vadd.f32 %v3586_v31, %v1874_v46  ;;  %v2547_v11 = vpop.f32.mrb[8].mxu0  ;;  %v1912_v22 = vmax.f32 %v1896_v60, 0.0  ;;  %2589 = vmatpush3.bf16.msra.mxu0 (!%p2281_p0), %v2846_v27  ;;  %2592 = vmatprep.mubr.msk.bf16.mxu0 (!%p2281_p0), %vm2950_vm11, %v2949_v54  ;;  %v2282_v46 = vld [vmem:[%s3706_s5] ss:$0 sm:$0xff] (!%p2281_p0) }
 0x19d   : > { %v1915_v58 = vmax.f32 %v1899_v55, 0.0  ;;  %v2628_v61 = vadd.f32 %v2547_v11, %v2457_v35  ;;  %v1815_v28 = vpop.f32.mrb[9].mxu0  ;;  %2590 = vmatprep.subr.bf16.mxu0 (!%p2281_p0), %v2949_v54 }
 0x19e   : > { %v1913_v5 = vmax.f32 %v1897_v30, 0.0  ;;  %v2629_v13 = vadd.f32 %v1815_v28, %v1134_v2  ;;  %v2548_v6 = vpop.f32.mrb[10].mxu0  ;;  %2601 = vmatpush3.bf16.msra.mxu1 %v2600_v18 }
 0x19f   : > { %v2606_v23 = vpack.c.bf16 %v1915_v58, %v1914_v29  ;;  %v1879_v15 = vmul.f32 %v2628_v61, %v3581_v12  ;;  %v2630_v24 = vadd.f32 %v2548_v6, %v2458_v39  ;;  %v1818_v25 = vpop.f32.mrb[11].mxu0  ;;  %2602 = vmatprep.subr.bf16.mxu1 %v2945_v0 }
 0x1a0   : > { %v2603_v32 = vpack.c.bf16 %v1913_v5, %v1912_v22  ;;  %v1877_v40 = vmul.f32 %v2629_v13, %v3581_v12  ;;  %v2631_v59 = vadd.f32 %v1818_v25, %v3568_v41 }
 0x1a1   : > { %v1902_v35 = vadd.f32 %v3586_v31, %v1879_v15  ;;  %v1880_v45 = vmul.f32 %v2630_v24, %v3581_v12 }
 0x1a2   : > { %v1900_v2 = vadd.f32 %v3586_v31, %v1877_v40  ;;  %v1878_v14 = vmul.f32 %v2631_v59, %v3581_v12  ;;  %2604 = vmatpush3.bf16.msra.mxu1 %v2603_v32 }
 0x1a3   : > { %v1903_v37 = vadd.f32 %v3586_v31, %v1880_v45  ;;  %2605 = vmatprep.subr.bf16.mxu1 %v2945_v0  ;;  %v1918_v53 = vmax.f32 %v1902_v35, 0.0 }
 0x1a4   : > { %v1901_v39 = vadd.f32 %v3586_v31, %v1878_v14  ;;  %v2551_v56 = vpop.f32.mrb[12].mxu0  ;;  %v1916_v48 = vmax.f32 %v1900_v2, 0.0 }
 0x1a5   : > { %v1919_v62 = vmax.f32 %v1903_v37, 0.0  ;;  %v2632_v41 = vadd.f32 %v2551_v56, %v3570_v42  ;;  %v1831_v57 = vpop.f32.mrb[13].mxu0 }
 0x1a6   : > { %v1917_v34 = vmax.f32 %v1901_v39, 0.0  ;;  %v2633_v52 = vadd.f32 %v1831_v57, %v3572_v47  ;;  %v2552_v49 = vpop.f32.mrb[14].mxu0  ;;  %2607 = vmatpush3.bf16.msra.mxu1 %v2606_v23 }
 0x1a7   : > { %v2612_v21 = vpack.c.bf16 %v1919_v62, %v1918_v53  ;;  %v1883_v26 = vmul.f32 %v2632_v41, %v3581_v12  ;;  %v2634_v16 = vadd.f32 %v2552_v49, %v3574_v50  ;;  %v1834_v36 = vpop.f32.mrb[15].mxu0  ;;  %2608 = vmatprep.subr.bf16.mxu1 %v2945_v0 }
 0x1a8   : > { %v2609_v3 = vpack.c.bf16 %v1917_v34, %v1916_v48  ;;  %v1881_v4 = vmul.f32 %v2633_v52, %v3581_v12  ;;  %v2635_v42 = vadd.f32 %v1834_v36, %v3576_v17 }
 0x1a9   : > { %v1906_v63 = vadd.f32 %v3586_v31, %v1883_v26  ;;  %v1884_v8 = vmul.f32 %v2634_v16, %v3581_v12 }
 0x1aa   : > { %v1904_v47 = vadd.f32 %v3586_v31, %v1881_v4  ;;  %v1882_v9 = vmul.f32 %v2635_v42, %v3581_v12  ;;  %2610 = vmatpush3.bf16.msra.mxu1 %v2609_v3  ;;  %v2948_v12 = vmov 1.0  }
 0x1ab   : > { %v1907_v44 = vadd.f32 %v3586_v31, %v1884_v8  ;;  %2611 = vmatprep.subr.bf16.mxu1 %v2945_v0  ;;  %v1922_v38 = vmax.f32 %v1906_v63, 0.0 }
 0x1ac   : > { %v1905_v50 = vadd.f32 %v3586_v31, %v1882_v9  ;;  %v1920_v10 = vmax.f32 %v1904_v47, 0.0 }
 0x1ad   : > { %v1923_v51 = vmax.f32 %v1907_v44, 0.0 }
 0x1ae   : > { %v1921_v18 = vmax.f32 %v1905_v50, 0.0  ;;  %2613 = vmatpush3.bf16.msra.mxu1 %v2612_v21 }
 0x1af   : > { %v2618_v17 = vpack.c.bf16 %v1923_v51, %v1922_v38  ;;  %2614 = vmatprep.subr.bf16.mxu1 %v2945_v0 }
 0x1b0   : > { %v2615_v19 = vpack.c.bf16 %v1921_v18, %v1920_v10 }
 0x1b2   : > { %2616 = vmatpush3.bf16.msra.mxu1 %v2615_v19 }
 0x1b3   : > { %2617 = vmatprep.subr.bf16.mxu1 %v2945_v0  ;;  %v2847_v0 = vld [vmem:[%s3705_s4 + $0x8] sm:$0xff] (!%p2281_p0)  }
 0x1b4   : > { %2591 = vmatpush3.bf16.msra.mxu0 (!%p2281_p0), %v2847_v0 }
 0x1b6   : > { %2619 = vmatpush3.bf16.msra.mxu1 %v2618_v17 }
 0x1b9   : > { %2586 = vmatmul.mubr.f32.vlgmr.msra.gmra.mrb[16].mxu1 %v2948_v12 }
 0x289   : > { %2001 = sbr.rel (%p2281_p0) target bundleno = 882 (0x372), region = 52 }
 0x28c   : > { %v1991_v1 = vpop.f32.mrb[16].mxu1 }
 0x28d   : > { %v1995_v7 = vadd.f32 %v1991_v1, %v1924_v43  ;;  %v2587_v31 = vpop.f32.mrb[17].mxu1 }
 0x28f   : > { %1997 = vst.msk [vmem:[#allocation2] sm:$0xff] %vm1996_vm10, %v1995_v7 }
 0x296   : > { %v2002_v33 = vld [vmem:[#allocation2] sm:$0xff] }
 0x297   : > { %v2003_v20 = vmul.f32 0.00390625, %v2002_v33 }
 0x299   : > { %v2004_v60 = vpack.c.bf16 %v2003_v20, %v2003_v20 }
 0x29b   : > { %2593 = vmatmul.mubr.msk.bf16.vlgmr.msra.gmra.mrb[0].mxu0 %vm1996_vm10, %v2004_v60 }
 0x36e   : > { %v2065_v55 = vpop.f32.mrb[0].mxu0 }
 0x36f   : > { %v2066_v30 = vadd.f32 %v2282_v46, %v2065_v55  ;;  %v2594_v11 = vpop.f32.mrb[1].mxu0 }
 0x370   : > { %v2068_v29 = vpop.f32.mrb[2].mxu0 }
 0x371   : > { %2071 = vst [vmem:[%s266_s30] sm:$0xff] %v2066_v30  ;;  %v2595_v58 = vpop.f32.mrb[3].mxu0 }
 0x372 PF: > { %s2287_s18 = sshll.u32 %s2930_s25, 7  ;;  %s2086_s12 = sshll.u32 %s266_s30, 4  ;;  %s2087_s12 = int_to_ptr.vmem [resolvable:$true] %s2086_s12 }
 0x373   : > { %s3650_s11 = scalar_lea.hbm %s3707_s6, %s2287_s18  ;;  %s2073_s15 = scalar_lea.sflag [#allocation4], %s264_s14 }
 0x374   : > { %s2848_s17 = scalar_lea.vmem %s2087_s12, 128  ;;  %s2951_s24 = smov [#allocation3]  }
 0x375   : > { %p2849_p1 = scmp.ne.s32.totalorder %s2087_s12, %s2848_s17  ;;  %s2852_s29 = sshll.u32 %s2951_s24, 4  ;;  %s2853_s29 = int_to_ptr.vmem [resolvable:$false] %s2852_s29 }
 0x376   : > { %s2854_s0 = scalar_lea.vmem %s2853_s29, 256  ;;  %p2855_p5 = scmp.lt.s32.totalorder %s2087_s12, %s2853_s29 }
 0x377   : > { %p2850_p2 = pnand %p2849_p1, %p3036_p3  ;;  %p2856_p6 = scmp.lt.s32.totalorder %s2854_s0, %s2848_s17 }
 0x379   : > { %p2851_p4 = pneg %p2850_p2  ;;  %p2857_p7 = por %p2856_p6, %p2855_p5 }
 0x37b   : > { %p2858_p8 = pnand %p2857_p7, %p2851_p4 }
 0x37d   : > { %2861 = shalt.err (!%p2858_p8)
}
 0x37e   : > { %s2862_s25 = scalar_lea.hbm %s3650_s11, 128  ;;  %s2866_s30 = scalar_lea.hbm %s3707_s6, 256 }
 0x37f   : > { %p2863_p10 = scmp.ne.s32.totalorder %s3650_s11, %s2862_s25  ;;  %p2867_p13 = scmp.lt.u32.totalorder %s3650_s11, %s3707_s6 }
 0x380   : > { %p2868_p0 = scmp.lt.u32.totalorder %s2866_s30, %s2862_s25  ;;  %p2870_p2 = scmp.lt.u32.totalorder %s2862_s25, %s3650_s11 }
 0x381   : > { %p2864_p11 = pnand %p2863_p10, %p3036_p3 }
 0x382   : > { %p2869_p1 = por %p2868_p0, %p2867_p13 }
 0x383   : > { %p2865_p12 = pneg %p2864_p11 }
 0x384   : > { %p2871_p4 = por %p2870_p2, %p2869_p1 }
 0x386   : > { %p2872_p5 = pnand %p2871_p4, %p2865_p12 }
 0x388   : > { %2875 = shalt.err (!%p2872_p5)
}
 0x389   : > { %2758 = dma.vmem_to_hbm [thread:$0]  (%p3036_p3), %s2087_s12, 128, %s3650_s11, %s2073_s15  }
 0x38a PF: > { %p2764_p6 = scmp.ge.s32.totalorder %s2942_s28, 2  ;;  %s2098_s0 = sand.u32 1, %s2914_s21  }
 0x38b   : > { %s2099_s20 = scalar_lea.sflag [#allocation4], %s2098_s0 }
 0x38c   : > { %p2761_p7 = pnand %p2764_p6, %p3046_p9 }
 0x38e   : > { %2909 = dma.done.wait (!%p2761_p7), %s2099_s20, 128  }
 0x38f   : > { %2911 = vsyncadd (!%p2761_p7), %s2099_s20, 4294967168  ;;  %s19_s28 = sadd.s32 1, %s2942_s28   ;;  %s3716_s21 = smov %s2918_s22 }
 0x390   : > { %p16_p8 = scmp.ge.s32.totalorder %s19_s28, 6   ;;  %s3717_s22 = smov %s2922_s23 }
 0x391   : > { %s3718_s23 = smov %s3054_s13  ;;  %s3719_s24 = smov %s2934_s26 }
 0x392   : > { %s3720_s25 = smov %s2938_s27  ;;  %s3721_s26 = smov %s3724_s7 }
 0x393   : > { %s3722_s27 = smov %s3728_s8  ;;  %18 = sbr.rel (!%p16_p8) target bundleno = 7 (0x7), region = 87 }
 0x39a   :  { %2104 = vsyncpa [#allocation4], 1 }
 0x39b   :  { %2106 = vsyncpa [#allocation4 + $0x1], 1 }

</bundles_post_ra>
